<compile_context>
chip_gen: v6e
topology: v6e:2x2x1
jax: 0.10.0
libtpu: 0.0.40
codegen_flags: <defaults>
</compile_context>

<pallas_src>
import functools
import math

import jax
import jax.numpy as jnp
from jax.experimental import pallas as pl
from jax.experimental.pallas import tpu as pltpu


def _round_up(v: int, m: int) -> int:
    return ((v + m - 1) // m) * m


def _lora_kernel(x_ref, w_ref, b_ref, a_ref, bmat_ref, o_ref, acc_ref, xa_ref):
    """One (i, j, k) grid step of  y = x @ W + bias + (x @ A) @ B."""
    k = pl.program_id(2)

    @pl.when(k == 0)
    def _init():
        acc_ref[...] = jnp.zeros_like(acc_ref)
        xa_ref[...] = jnp.zeros_like(xa_ref)

    x = x_ref[...]
    # Base path partial product, accumulated in f32 on the MXU.
    acc_ref[...] += jnp.dot(x, w_ref[...], preferred_element_type=jnp.float32)
    # LoRA down-projection partial product (tiny: r_pad lanes), also f32.
    xa_ref[...] += jnp.dot(x, a_ref[...], preferred_element_type=jnp.float32)

    @pl.when(k == pl.num_programs(2) - 1)
    def _finalize():
        # One small xa @ B matmul and one bias add per output tile.
        lora = jnp.dot(xa_ref[...].astype(bmat_ref.dtype), bmat_ref[...],
                       preferred_element_type=jnp.float32)
        o_ref[...] = (acc_ref[...] + b_ref[...] + lora).astype(o_ref.dtype)


@functools.partial(jax.jit, static_argnames=("compute_dtype", "tm", "tn", "tk"))
def lora_forward(x, w, bias, a, b_mat, *, compute_dtype=None,
                 tm=256, tn=256, tk=512):
    """x: [M, D_in]; w: [D_in, D_out]; bias: [1, D_out]; a: [D_in, r]; b_mat: [r, D_out].

    compute_dtype: optionally cast x/W/A/B (e.g. jnp.bfloat16 on v6e/v7x) while
    keeping f32 MXU accumulation and an f32/original-dtype output.
    """
    out_dtype = x.dtype
    M, D_in = x.shape
    D_out = w.shape[1]
    r = a.shape[1]

    cdt = jnp.dtype(compute_dtype) if compute_dtype is not None else jnp.dtype(x.dtype)
    x = x.astype(cdt)
    w = w.astype(cdt)
    a = a.astype(cdt)
    b_mat = b_mat.astype(cdt)
    bias = bias.astype(jnp.float32)  # added once post-accumulation, keep f32

    # Sublane width: 8 rows for 4-byte dtypes, 16 for 2-byte dtypes.
    sub = 8 * max(1, 4 // cdt.itemsize)

    # Effective tile sizes: never larger than the (aligned) problem dims.
    tm_e = min(tm, _round_up(M, sub))
    tn_e = min(tn, _round_up(D_out, 128))
    tk_e = min(tk, _round_up(D_in, 128))
    r_p = _round_up(r, 8)

    # Zero-pad every dim up to a tile multiple (zeros do not change the math).
    M_p = _round_up(M, tm_e)
    N_p = _round_up(D_out, tn_e)
    K_p = _round_up(D_in, tk_e)

    x_p = jnp.pad(x, ((0, M_p - M), (0, K_p - D_in)))
    w_p = jnp.pad(w, ((0, K_p - D_in), (0, N_p - D_out)))
    b_p = jnp.pad(bias, ((0, 0), (0, N_p - D_out)))
    a_p = jnp.pad(a, ((0, K_p - D_in), (0, r_p - r)))
    bm_p = jnp.pad(b_mat, ((0, r_p - r), (0, N_p - D_out)))

    grid = (M_p // tm_e, N_p // tn_e, K_p // tk_e)

    flops = 2 * M * D_in * D_out + 2 * M * D_in * r + 2 * M * r * D_out
    bytes_accessed = (
        x_p.size * x_p.dtype.itemsize
        + w_p.size * w_p.dtype.itemsize
        + b_p.size * b_p.dtype.itemsize
        + a_p.size * a_p.dtype.itemsize
        + bm_p.size * bm_p.dtype.itemsize
        + M_p * N_p * jnp.dtype(out_dtype).itemsize
    )

    out_p = pl.pallas_call(
        _lora_kernel,
        out_shape=jax.ShapeDtypeStruct((M_p, N_p), out_dtype),
        grid_spec=pltpu.PrefetchScalarGridSpec(
            num_scalar_prefetch=0,
            grid=grid,
            in_specs=[
                pl.BlockSpec((tm_e, tk_e), lambda i, j, k: (i, k)),   # x
                pl.BlockSpec((tk_e, tn_e), lambda i, j, k: (k, j)),   # W
                pl.BlockSpec((1, tn_e), lambda i, j, k: (0, j)),      # bias
                pl.BlockSpec((tk_e, r_p), lambda i, j, k: (k, 0)),    # A
                pl.BlockSpec((r_p, tn_e), lambda i, j, k: (0, j)),    # B
            ],
            out_specs=pl.BlockSpec((tm_e, tn_e), lambda i, j, k: (i, j)),
            scratch_shapes=[
                pltpu.VMEM((tm_e, tn_e), jnp.float32),  # base-path accumulator
                pltpu.VMEM((tm_e, r_p), jnp.float32),   # xa = x @ A accumulator
            ],
        ),
        compiler_params=pltpu.CompilerParams(
            dimension_semantics=("parallel", "parallel", "arbitrary"),
        ),
        cost_estimate=pl.CostEstimate(
            flops=flops, transcendentals=0, bytes_accessed=bytes_accessed),
    )(x_p, w_p, b_p, a_p, bm_p)

    return out_p[:M, :D_out]


def lora_reference(x, w, bias, a, b_mat):
    return x @ w + bias + (x @ a) @ b_mat


if __name__ == "__main__":
    # Small shapes consistent with an nn.Linear-based LoRA layer:
    #   w   = nn.Linear(in_features=32, out_features=32)
    #   w_a = nn.Linear(32, r=4, bias=False)
    #   w_b = nn.Linear(4, 32, bias=False)
    # Input: batch=2, seq=4 -> flattened to M=8 tokens.
    batch, seq, d_in, d_out, rank = 2, 4, 32, 32, 4
    M = batch * seq

    key = jax.random.PRNGKey(0)
    kx, kw, kb, ka, kbm = jax.random.split(key, 5)

    x = jax.random.normal(kx, (batch, seq, d_in), dtype=jnp.float32)
    x2d = x.reshape(M, d_in)

    # Deterministic "Kaiming-ish" init scales (synthetic weights, no checkpoint).
    w = jax.random.normal(kw, (d_in, d_out), dtype=jnp.float32) / math.sqrt(d_in)
    bias = jax.random.normal(kb, (1, d_out), dtype=jnp.float32) * 0.01
    a = jax.random.normal(ka, (d_in, rank), dtype=jnp.float32) / math.sqrt(d_in)
    # LoRA B is conventionally zero-init; use small nonzero values so the
    # kernel's LoRA path is actually exercised.
    b_mat = jax.random.normal(kbm, (rank, d_out), dtype=jnp.float32) * 0.1

    ref = lora_reference(x2d, w, bias, a, b_mat)

    # f32 compute path (strict check).
    out = jax.block_until_ready(lora_forward(x2d, w, bias, a, b_mat))
    assert out.shape == (M, d_out)
    assert jnp.allclose(out, ref, atol=1e-4, rtol=1e-4), "f32 mismatch vs reference"

    # bf16 operand / f32 accumulation path (v6e/v7x MXU perf mode), looser tol.
    out_bf16 = jax.block_until_ready(
        lora_forward(x2d, w, bias, a, b_mat, compute_dtype=jnp.bfloat16))
    assert out_bf16.shape == (M, d_out)
    assert jnp.allclose(out_bf16, ref, atol=5e-2, rtol=5e-2), "bf16 mismatch vs reference"

    # Reshape back to [batch, seq, d_out] if desired (glue, not kernel work).
    _ = out.reshape(batch, seq, d_out)

    print("KERNEL_OK")
</pallas_src>

<mosaic_0001>
module attributes {stable_mosaic.version = 11 : i64} {
  func.func @_lora_kernel(%arg0: i32, %arg1: i32, %arg2: i32, %arg3: memref<8x128xf32, #tpu.memory_space<vmem>>, %arg4: memref<128x128xf32, #tpu.memory_space<vmem>>, %arg5: memref<1x128xf32, #tpu.memory_space<vmem>>, %arg6: memref<128x8xf32, #tpu.memory_space<vmem>>, %arg7: memref<8x128xf32, #tpu.memory_space<vmem>>, %arg8: memref<8x128xf32, #tpu.memory_space<vmem>>, %arg9: memref<8x128xf32, #tpu.memory_space<vmem>>, %arg10: memref<8x8xf32, #tpu.memory_space<vmem>>) attributes {dimension_semantics = [#tpu.dimension_semantics<parallel>, #tpu.dimension_semantics<parallel>, #tpu.dimension_semantics<arbitrary>], iteration_bounds = array<i64: 1, 1, 1>, scalar_prefetch = 0 : i64, scratch_operands = 2 : i64, tpu.core_type = #tpu.core_type<tc>, window_params = [{transform_indices = @transform_0, window_bounds = array<i64: 8, 128>}, {transform_indices = @transform_1, window_bounds = array<i64: 128, 128>}, {transform_indices = @transform_2, window_bounds = array<i64: 1, 128>}, {transform_indices = @transform_3, window_bounds = array<i64: 128, 8>}, {transform_indices = @transform_4, window_bounds = array<i64: 8, 128>}, {transform_indices = @transform_5, window_bounds = array<i64: 8, 128>}]} {
    %c0_i32 = arith.constant 0 : i32
    %0 = arith.cmpi eq, %arg2, %c0_i32 : i32
    %1 = arith.extui %0 : i1 to i32
    %c0_i32_0 = arith.constant 0 : i32
    %2 = arith.cmpi ne, %1, %c0_i32_0 : i32
    scf.if %2 {
      %cst_17 = arith.constant 0.000000e+00 : f32
      %17 = vector.broadcast %cst_17 : f32 to vector<8x128xf32>
      %c0_18 = arith.constant 0 : index
      %c0_19 = arith.constant 0 : index
      %18 = vector.load %arg9[%c0_18, %c0_19] : memref<8x128xf32, #tpu.memory_space<vmem>>, vector<8x128xf32>
      tpu.vector_store %arg9[%c0_18, %c0_19], %17 {strides = array<i32>} : memref<8x128xf32, #tpu.memory_space<vmem>>, vector<8x128xf32>,
      %cst_20 = arith.constant 0.000000e+00 : f32
      %19 = vector.broadcast %cst_20 : f32 to vector<8x8xf32>
      %c0_21 = arith.constant 0 : index
      %c0_22 = arith.constant 0 : index
      %20 = vector.load %arg10[%c0_21, %c0_22] : memref<8x8xf32, #tpu.memory_space<vmem>>, vector<8x8xf32>
      tpu.vector_store %arg10[%c0_21, %c0_22], %19 {strides = array<i32>} : memref<8x8xf32, #tpu.memory_space<vmem>>, vector<8x8xf32>,
    } else {
    }
    %c0 = arith.constant 0 : index
    %c0_1 = arith.constant 0 : index
    %3 = vector.load %arg3[%c0, %c0_1] : memref<8x128xf32, #tpu.memory_space<vmem>>, vector<8x128xf32>
    %c0_2 = arith.constant 0 : index
    %c0_3 = arith.constant 0 : index
    %4 = vector.load %arg9[%c0_2, %c0_3] : memref<8x128xf32, #tpu.memory_space<vmem>>, vector<8x128xf32>
    %c0_4 = arith.constant 0 : index
    %c0_5 = arith.constant 0 : index
    %5 = vector.load %arg4[%c0_4, %c0_5] : memref<128x128xf32, #tpu.memory_space<vmem>>, vector<128x128xf32>
    %cst = arith.constant dense<0.000000e+00> : vector<8x128xf32>
    %6 = tpu.matmul %3, %5, %cst {dimension_numbers = #tpu.dot_dimension_numbers<[1], [0], [0], [1], [0, 0, 1, 1], [], []>} : vector<8x128xf32>, vector<128x128xf32>, vector<8x128xf32> -> vector<8x128xf32>
    %7 = arith.addf %4, %6 : vector<8x128xf32>
    %c0_6 = arith.constant 0 : index
    %c0_7 = arith.constant 0 : index
    %8 = vector.load %arg9[%c0_6, %c0_7] : memref<8x128xf32, #tpu.memory_space<vmem>>, vector<8x128xf32>
    tpu.vector_store %arg9[%c0_6, %c0_7], %7 {strides = array<i32>} : memref<8x128xf32, #tpu.memory_space<vmem>>, vector<8x128xf32>,
    %c0_8 = arith.constant 0 : index
    %c0_9 = arith.constant 0 : index
    %9 = vector.load %arg10[%c0_8, %c0_9] : memref<8x8xf32, #tpu.memory_space<vmem>>, vector<8x8xf32>
    %c0_10 = arith.constant 0 : index
    %c0_11 = arith.constant 0 : index
    %10 = vector.load %arg6[%c0_10, %c0_11] : memref<128x8xf32, #tpu.memory_space<vmem>>, vector<128x8xf32>
    %cst_12 = arith.constant dense<0.000000e+00> : vector<8x8xf32>
    %11 = tpu.matmul %3, %10, %cst_12 {dimension_numbers = #tpu.dot_dimension_numbers<[1], [0], [0], [1], [0, 0, 1, 1], [], []>} : vector<8x128xf32>, vector<128x8xf32>, vector<8x8xf32> -> vector<8x8xf32>
    %12 = arith.addf %9, %11 : vector<8x8xf32>
    %c0_13 = arith.constant 0 : index
    %c0_14 = arith.constant 0 : index
    %13 = vector.load %arg10[%c0_13, %c0_14] : memref<8x8xf32, #tpu.memory_space<vmem>>, vector<8x8xf32>
    tpu.vector_store %arg10[%c0_13, %c0_14], %12 {strides = array<i32>} : memref<8x8xf32, #tpu.memory_space<vmem>>, vector<8x8xf32>,
    %c0_i32_15 = arith.constant 0 : i32
    %14 = arith.cmpi eq, %arg2, %c0_i32_15 : i32
    %15 = arith.extui %14 : i1 to i32
    %c0_i32_16 = arith.constant 0 : i32
    %16 = arith.cmpi ne, %15, %c0_i32_16 : i32
    scf.if %16 {
      %c0_17 = arith.constant 0 : index
      %c0_18 = arith.constant 0 : index
      %17 = vector.load %arg10[%c0_17, %c0_18] : memref<8x8xf32, #tpu.memory_space<vmem>>, vector<8x8xf32>
      %c0_19 = arith.constant 0 : index
      %c0_20 = arith.constant 0 : index
      %18 = vector.load %arg7[%c0_19, %c0_20] : memref<8x128xf32, #tpu.memory_space<vmem>>, vector<8x128xf32>
      %cst_21 = arith.constant dense<0.000000e+00> : vector<8x128xf32>
      %19 = tpu.matmul %17, %18, %cst_21 {dimension_numbers = #tpu.dot_dimension_numbers<[1], [0], [0], [1], [0, 0, 1, 1], [], []>} : vector<8x8xf32>, vector<8x128xf32>, vector<8x128xf32> -> vector<8x128xf32>
      %c0_22 = arith.constant 0 : index
      %c0_23 = arith.constant 0 : index
      %20 = vector.load %arg9[%c0_22, %c0_23] : memref<8x128xf32, #tpu.memory_space<vmem>>, vector<8x128xf32>
      %c0_24 = arith.constant 0 : index
      %c0_25 = arith.constant 0 : index
      %21 = vector.load %arg5[%c0_24, %c0_25] : memref<1x128xf32, #tpu.memory_space<vmem>>, vector<1x128xf32>
      %22 = vector.broadcast %21 : vector<1x128xf32> to vector<8x128xf32>
      %23 = arith.addf %20, %22 : vector<8x128xf32>
      %24 = arith.addf %23, %19 : vector<8x128xf32>
      %c0_26 = arith.constant 0 : index
      %c0_27 = arith.constant 0 : index
      %25 = vector.load %arg8[%c0_26, %c0_27] : memref<8x128xf32, #tpu.memory_space<vmem>>, vector<8x128xf32>
      tpu.vector_store %arg8[%c0_26, %c0_27], %24 {strides = array<i32>} : memref<8x128xf32, #tpu.memory_space<vmem>>, vector<8x128xf32>,
    } else {
    }
    return
  }
  func.func @transform_0(%arg0: i32, %arg1: i32, %arg2: i32) -> (i32, i32) {
    %c0_i32 = arith.constant 0 : i32
    return %arg0, %arg2 : i32, i32
  }
  func.func @transform_1(%arg0: i32, %arg1: i32, %arg2: i32) -> (i32, i32) {
    %c0_i32 = arith.constant 0 : i32
    return %arg2, %arg1 : i32, i32
  }
  func.func @transform_2(%arg0: i32, %arg1: i32, %arg2: i32) -> (i32, i32) {
    %c0_i32 = arith.constant 0 : i32
    %c0_i32_0 = arith.constant 0 : i32
    return %c0_i32, %arg1 : i32, i32
  }
  func.func @transform_3(%arg0: i32, %arg1: i32, %arg2: i32) -> (i32, i32) {
    %c0_i32 = arith.constant 0 : i32
    %c0_i32_0 = arith.constant 0 : i32
    return %arg2, %c0_i32 : i32, i32
  }
  func.func @transform_4(%arg0: i32, %arg1: i32, %arg2: i32) -> (i32, i32) {
    %c0_i32 = arith.constant 0 : i32
    %c0_i32_0 = arith.constant 0 : i32
    return %c0_i32, %arg1 : i32, i32
  }
  func.func @transform_5(%arg0: i32, %arg1: i32, %arg2: i32) -> (i32, i32) {
    %c0_i32 = arith.constant 0 : i32
    return %arg0, %arg1 : i32, i32
  }
}

</mosaic_0001>

<bundles_post_ra>
// kernel: lora_forward.1
= control target key start
LH: loop header
LB: loop body
LE: loop exit
PB: predicated region body
PF: predicated region fallthrough
CT: control target
= control target key end

     0   :  { %vm26_vm0 = vcmask 64512   ;;  %v449_v1 = vmov 0.0   ;;  %vm450_vm1 = vmmov 0   ;;  %s633_s0 = inlined_call_operand.vmem [shape: f32[8,128], index: 0, kind: input, shape index: {}]   ;;  %s634_s1 = inlined_call_operand.vmem [shape: f32[128,128], index: 1, kind: input, shape index: {}]   ;;  %s635_s2 = inlined_call_operand.vmem [shape: f32[1,128], index: 2, kind: input, shape index: {}]   ;;  %s636_s3 = inlined_call_operand.vmem [shape: f32[128,8], index: 3, kind: input, shape index: {}]   ;;  %s637_s4 = inlined_call_operand.vmem [shape: f32[8,128], index: 4, kind: input, shape index: {}]   ;;  %s638_s5 = inlined_call_operand.hbm [shape: f32[8,128], index: 5, kind: output, shape index: {}]  }
   0x1   :  { %v134_v0 = vld [vmem:[%s636_s3 + $0x78] sm:$0xff]  ;;  %384 = vmatprep.subr.mxu1 %v449_v1  ;;  %v133_v2 = vld [vmem:[%s636_s3 + $0x70] sm:$0xff]  ;;  %416 = vmatprep.mubr.msk.f32.mxu1 %vm450_vm1, %v449_v1  ;;  %27 = vst.msk [vmem:[#allocation3] sm:$0xff] %vm26_vm0, %v449_v1  ;;  %v132_v3 = vld [vmem:[%s636_s3 + $0x68] sm:$0xff] }
   0x2   :  { %385 = vmatpush3.msra.mxu1 %v134_v0  ;;  %349 = vmatprep.subr.mxu0 %v449_v1  ;;  %v131_v4 = vld [vmem:[%s636_s3 + $0x60] sm:$0xff]  ;;  %v45_v5 = vld [vmem:[%s634_s1 + $0x78] sm:$0xff]  ;;  %v44_v6 = vld [vmem:[%s634_s1 + $0x70] sm:$0xff] }
   0x3   :  { %386 = vmatprep.subr.mxu1 %v449_v1  ;;  %381 = vmatprep.mubr.msk.f32.mxu0 %vm450_vm1, %v449_v1  ;;  %v130_v7 = vld [vmem:[%s636_s3 + $0x58] sm:$0xff]  ;;  %v43_v8 = vld [vmem:[%s634_s1 + $0x68] sm:$0xff]  ;;  %v129_v9 = vld [vmem:[%s636_s3 + $0x50] sm:$0xff] }
   0x4   :  { %387 = vmatpush3.msra.mxu1 %v133_v2  ;;  %350 = vmatpush3.msra.mxu0 %v45_v5  ;;  %v42_v10 = vld [vmem:[%s634_s1 + $0x60] sm:$0xff] }
   0x5   :  { %388 = vmatprep.subr.mxu1 %v449_v1  ;;  %351 = vmatprep.subr.mxu0 %v449_v1 }
   0x6   :  { %389 = vmatpush3.msra.mxu1 %v132_v3  ;;  %352 = vmatpush3.msra.mxu0 %v44_v6 }
   0x7   :  { %390 = vmatprep.subr.mxu1 %v449_v1  ;;  %353 = vmatprep.subr.mxu0 %v449_v1 }
   0x8   :  { %391 = vmatpush3.msra.mxu1 %v131_v4  ;;  %354 = vmatpush3.msra.mxu0 %v43_v8 }
   0x9   :  { %392 = vmatprep.subr.mxu1 %v449_v1 }
   0xa   :  { %393 = vmatpush3.msra.mxu1 %v130_v7 }
   0xb   :  { %10 = vsyncpa [#allocation5], 0  ;;  %394 = vmatprep.subr.mxu1 %v449_v1  ;;  %v128_v11 = vld [vmem:[%s636_s3 + $0x48] sm:$0xff]  ;;  %355 = vmatprep.subr.mxu0 %v449_v1  ;;  %v41_v12 = vld [vmem:[%s634_s1 + $0x58] sm:$0xff]  ;;  %s451_s9 = smov [#allocation4]  }
   0xc   :  { %395 = vmatpush3.msra.mxu1 %v129_v9  ;;  %356 = vmatpush3.msra.mxu0 %v42_v10  ;;  %v127_v13 = vld [vmem:[%s636_s3 + $0x40] sm:$0xff]  ;;  %v40_v14 = vld [vmem:[%s634_s1 + $0x50] sm:$0xff]  ;;  %v126_v15 = vld [vmem:[%s636_s3 + $0x38] sm:$0xff]  ;;  %s303_s10 = sshll.u32 %s451_s9, 4  ;;  %s304_s10 = int_to_ptr.vmem [resolvable:$true] %s303_s10 }
   0xd   :  { %396 = vmatprep.subr.mxu1 %v449_v1  ;;  %357 = vmatprep.subr.mxu0 %v449_v1  ;;  %v39_v16 = vld [vmem:[%s634_s1 + $0x48] sm:$0xff]  ;;  %v125_v17 = vld [vmem:[%s636_s3 + $0x30] sm:$0xff]  ;;  %v38_v18 = vld [vmem:[%s634_s1 + $0x40] sm:$0xff]  ;;  %s427_s11 = scalar_lea.vmem %s304_s10, 128  ;;  %p432_p1 = scmp.lt.s32.totalorder %s304_s10, %s304_s10 }
   0xe   :  { %397 = vmatpush3.msra.mxu1 %v128_v11  ;;  %358 = vmatpush3.msra.mxu0 %v41_v12  ;;  %v124_v19 = vld [vmem:[%s636_s3 + $0x28] sm:$0xff]  ;;  %v37_v20 = vld [vmem:[%s634_s1 + $0x38] sm:$0xff]  ;;  %v123_v21 = vld [vmem:[%s636_s3 + $0x20] sm:$0xff]  ;;  %p428_p0 = scmp.ne.s32.totalorder %s304_s10, %s427_s11  ;;  %p433_p2 = scmp.lt.s32.totalorder %s427_s11, %s427_s11 }
   0xf   :  { %398 = vmatprep.subr.mxu1 %v449_v1  ;;  %359 = vmatprep.subr.mxu0 %v449_v1  ;;  %v36_v22 = vld [vmem:[%s634_s1 + $0x30] sm:$0xff]  ;;  %v122_v23 = vld [vmem:[%s636_s3 + $0x18] sm:$0xff]  ;;  %v35_v24 = vld [vmem:[%s634_s1 + $0x28] sm:$0xff] }
  0x10   :  { %399 = vmatpush3.msra.mxu1 %v127_v13  ;;  %360 = vmatpush3.msra.mxu0 %v40_v14  ;;  %v121_v25 = vld [vmem:[%s636_s3 + $0x10] sm:$0xff]  ;;  %v34_v26 = vld [vmem:[%s634_s1 + $0x20] sm:$0xff]  ;;  %v120_v27 = vld [vmem:[%s636_s3 + $0x8] sm:$0xff]  ;;  %p434_p3 = por %p433_p2, %p432_p1 }
  0x11   :  { %400 = vmatprep.subr.mxu1 %v449_v1  ;;  %361 = vmatprep.subr.mxu0 %v449_v1  ;;  %v33_v28 = vld [vmem:[%s634_s1 + $0x18] sm:$0xff]  ;;  %v119_v29 = vld [vmem:[%s636_s3] sm:$0xff]  ;;  %v32_v30 = vld [vmem:[%s634_s1 + $0x10] sm:$0xff] }
  0x12   :  { %401 = vmatpush3.msra.mxu1 %v126_v15  ;;  %362 = vmatpush3.msra.mxu0 %v39_v16  ;;  %v28_v31 = vld [vmem:[%s633_s0] sm:$0xff]  ;;  %v31_v32 = vld [vmem:[%s634_s1 + $0x8] sm:$0xff]  ;;  %p435_p4 = pnand %p434_p3, %p428_p0 }
  0x13   :  { %402 = vmatprep.subr.mxu1 %v449_v1  ;;  %363 = vmatprep.subr.mxu0 %v449_v1  ;;  %v30_v33 = vld [vmem:[%s634_s1] sm:$0xff] }
  0x14   :  { %403 = vmatpush3.msra.mxu1 %v125_v17  ;;  %364 = vmatpush3.msra.mxu0 %v38_v18  ;;  %v212_v34 = vld [vmem:[%s637_s4] sm:$0xff] }
  0x15   :  { %404 = vmatprep.subr.mxu1 %v449_v1  ;;  %365 = vmatprep.subr.mxu0 %v449_v1  ;;  %v118_v35 = vld [vmem:[#allocation3] sm:$0xff] }
  0x16   :  { %405 = vmatpush3.msra.mxu1 %v124_v19  ;;  %366 = vmatpush3.msra.mxu0 %v37_v20  ;;  %v312_v42 = vld [vmem:[%s635_s2] ss:$0 sm:$0xff] }
  0x17   :  { %406 = vmatprep.subr.mxu1 %v449_v1  ;;  %367 = vmatprep.subr.mxu0 %v449_v1 }
  0x18   :  { %407 = vmatpush3.msra.mxu1 %v123_v21  ;;  %368 = vmatpush3.msra.mxu0 %v36_v22 }
  0x19   :  { %408 = vmatprep.subr.mxu1 %v449_v1  ;;  %369 = vmatprep.subr.mxu0 %v449_v1 }
  0x1a   :  { %409 = vmatpush3.msra.mxu1 %v122_v23  ;;  %370 = vmatpush3.msra.mxu0 %v35_v24 }
  0x1b   :  { %410 = vmatprep.subr.mxu1 %v449_v1  ;;  %371 = vmatprep.subr.mxu0 %v449_v1 }
  0x1c   :  { %411 = vmatpush3.msra.mxu1 %v121_v25  ;;  %372 = vmatpush3.msra.mxu0 %v34_v26 }
  0x1d   :  { %412 = vmatprep.subr.mxu1 %v449_v1  ;;  %373 = vmatprep.subr.mxu0 %v449_v1 }
  0x1e   :  { %413 = vmatpush3.msra.mxu1 %v120_v27  ;;  %374 = vmatpush3.msra.mxu0 %v33_v28 }
  0x1f   :  { %414 = vmatprep.subr.mxu1 %v449_v1  ;;  %375 = vmatprep.subr.mxu0 %v449_v1 }
  0x20   :  { %415 = vmatpush3.msra.mxu1 %v119_v29  ;;  %376 = vmatpush3.msra.mxu0 %v32_v30 }
  0x21   :  { %417 = vmatmul.mubr.f32.vlgmr.msra.gmra.mxu1 %v28_v31  ;;  %377 = vmatprep.subr.mxu0 %v449_v1 }
  0x22   :  { %378 = vmatpush3.msra.mxu0 %v31_v32 }
  0x23   :  { %379 = vmatprep.subr.mxu0 %v449_v1 }
  0x24   :  { %380 = vmatpush3.msra.mxu0 %v30_v33 }
  0x25   :  { %382 = vmatmul.mubr.f32.vlgmr.msra.gmra.mxu0 %v28_v31  ;;  %419 = vmatprep.subr.mxu0 %v449_v1 }
  0x26   :  { %420 = vmatpush3.msra.mxu0 %v212_v34  ;;  %421 = vmatprep.mubr.msk.f32.mxu0 %vm450_vm1, %v449_v1 }
  0xe1   :  { %v201_v36 = vpop.f32.mrf.mxu1 }
  0xe2   :  { %v205_v37 = vadd.f32 %v201_v36, %v118_v35 }
  0xe3   :  { %v418_v38 = vpop.f32.mrf.mxu1 }
  0xe4   :  { %207 = vst.msk [vmem:[#allocation3] sm:$0xff] %vm26_vm0, %v205_v37 }
  0xe5   :  { %v112_v40 = vpop.f32.mrf.mxu0 }
  0xe6   :  { %v294_v43 = vadd.f32 %v312_v42, %v112_v40 }
  0xe7   :  { %v383_v41 = vpop.f32.mrf.mxu0 }
  0xeb   :  { %v211_v39 = vld [vmem:[#allocation3] sm:$0xff] }
  0xec   :  { %422 = vmatmul.mubr.msk.f32.vlgmr.msra.gmra.mxu0 %vm26_vm0, %v211_v39 }
 0x1ac   :  { %v282_v44 = vpop.f32.mrf.mxu0 }
 0x1ad   :  { %v295_v45 = vadd.f32 %v294_v43, %v282_v44 }
 0x1ae   :  { %v423_v46 = vpop.f32.mrf.mxu0 }
 0x1af   :  { %296 = vst [vmem:[#allocation4] sm:$0xff] %v295_v45 }
 0x1b0   :  { %438 = shalt.err (!%p435_p4)
}
 0x1b1   :  { %306 = dma.vmem_to_hbm [thread:$0]  %s304_s10, 128, %s638_s5, [#allocation5]  }
 0x1b2   :  { %447 = dma.done.wait [#allocation5], 128  }
 0x1b3   :  { %448 = vsyncadd [#allocation5], 4294967168 }
 0x1b4   :  { %310 = vsyncpa [#allocation5], 1 }

</bundles_post_ra>
